<compile_context>
chip_gen: v5e
topology: v5e:2x2
jax: 0.10.0
libtpu: 0.0.40
codegen_flags: <defaults>
</compile_context>

<pallas_src>
import jax
import jax.numpy as jnp
from jax import lax
from jax.experimental import pallas as pl
from jax.experimental.pallas import tpu as pltpu

BN_EPS = 1e-5


def _bn_kernel(feats_ref, gamma_ref, beta_ref, bn_ref):
    """BatchNorm1d, training semantics: batch mean + biased batch variance."""
    x = feats_ref[...].astype(jnp.float32)                       # [B, D]
    mean = jnp.mean(x, axis=0, keepdims=True)                    # [1, D]
    centered = x - mean
    var = jnp.mean(centered * centered, axis=0, keepdims=True)   # biased
    inv_std = lax.rsqrt(var + BN_EPS)
    bn = centered * inv_std * gamma_ref[...] + beta_ref[...]
    bn_ref[...] = bn.astype(bn_ref.dtype)
    # TODO(synk): running_mean/running_var buffer updates (PyTorch training-mode
    # side effect) are not produced; this is a pure forward pass.


def _classifier_kernel(bn_ref, wt_ref, logits_ref):
    """One class tile of logits = bn @ W^T.

    wt_ref is the pre-transposed weight tile [D, TC] -- no in-kernel transpose.
    bn is cast to the weight dtype (bf16 weights hit the MXU at full rate);
    accumulation stays f32 via preferred_element_type.
    """
    bn = bn_ref[...].astype(wt_ref.dtype)                        # [B, D]
    logits = jnp.dot(bn, wt_ref[...], preferred_element_type=jnp.float32)
    logits_ref[...] = logits.astype(logits_ref.dtype)


def _round_up(x, m):
    return (x + m - 1) // m * m


def _choose_class_tile(c_pad):
    """Largest multiple of 128 (<= 512) that divides the padded class count."""
    units = c_pad // 128
    for k in (4, 3, 2, 1):
        if units % k == 0:
            return 128 * k
    return 128


def bnhead_forward(feats, bn_gamma, bn_beta, cls_weight):
    """BNHead training-mode forward. Returns a dict like the PyTorch module."""
    B, D = feats.shape
    C, D2 = cls_weight.shape
    assert D == D2

    gamma2d = bn_gamma.reshape(1, D).astype(jnp.float32)
    beta2d = bn_beta.reshape(1, D).astype(jnp.float32)

    # ---- Kernel 1: BatchNorm1d over the batch axis (single block) ----
    bn_feats = pl.pallas_call(
        _bn_kernel,
        out_shape=jax.ShapeDtypeStruct((B, D), jnp.float32),
        grid_spec=pltpu.PrefetchScalarGridSpec(
            num_scalar_prefetch=0,
            grid=(1,),
            in_specs=[
                pl.BlockSpec((B, D), lambda i: (0, 0)),
                pl.BlockSpec((1, D), lambda i: (0, 0)),
                pl.BlockSpec((1, D), lambda i: (0, 0)),
            ],
            out_specs=pl.BlockSpec((B, D), lambda i: (0, 0)),
        ),
        compiler_params=pltpu.CompilerParams(
            dimension_semantics=("arbitrary",)),
    )(feats, gamma2d, beta2d)

    # ---- Kernel 2: linear classifier, tiled (and pipelined) over classes ----
    c_pad = _round_up(C, 128)                 # lane-dense output tiles
    tc = _choose_class_tile(c_pad)
    n_tiles = c_pad // tc

    # Pad classes with zero rows and pre-transpose once: [C, D] -> [D, c_pad].
    w_pad = jnp.pad(cls_weight, ((0, c_pad - C), (0, 0)))
    wt = jnp.transpose(w_pad)

    # VMEM budget: double-buffered weight + logits tiles, resident bn block.
    est = (2 * D * tc * wt.dtype.itemsize
           + 2 * B * tc * 4
           + B * D * 4
           + (1 << 20))
    vmem_limit = int(min(max(2 * est, 32 << 20), 64 << 20))

    logits_pad = pl.pallas_call(
        _classifier_kernel,
        out_shape=jax.ShapeDtypeStruct((B, c_pad), jnp.float32),
        grid_spec=pltpu.PrefetchScalarGridSpec(
            num_scalar_prefetch=0,
            grid=(n_tiles,),
            in_specs=[
                pl.BlockSpec((B, D), lambda j: (0, 0)),    # bn_feats, resident
                pl.BlockSpec((D, tc), lambda j: (0, j)),   # weight tile, streamed
            ],
            out_specs=pl.BlockSpec((B, tc), lambda j: (0, j)),
        ),
        compiler_params=pltpu.CompilerParams(
            dimension_semantics=("parallel",),             # megacore on v7x
            vmem_limit_bytes=vmem_limit),
    )(bn_feats, wt)

    logits = logits_pad[:, :C] if c_pad != C else logits_pad

    return {
        "feats": feats,                # middle_dim is None -> raw input passthrough
        "bn_feats": bn_feats,
        "logits": logits,
        "logits_distill": logits,      # identical math for the 'linear' classifier
    }


def _reference_forward(feats, bn_gamma, bn_beta, cls_weight):
    """Pure-JAX reference for correctness check."""
    x = feats.astype(jnp.float32)
    mean = jnp.mean(x, axis=0, keepdims=True)
    var = jnp.mean((x - mean) ** 2, axis=0, keepdims=True)
    bn = (x - mean) / jnp.sqrt(var + BN_EPS) * bn_gamma[None, :] + bn_beta[None, :]
    logits = bn @ cls_weight.astype(jnp.float32).T
    return bn, logits


if __name__ == "__main__":
    # Small, module-consistent shapes: batch=8, in_dim=32, class_num=16.
    B, IN_DIM, CLASS_NUM = 8, 32, 16

    key = jax.random.PRNGKey(0)
    k_feats, k_w = jax.random.split(key)

    feats = jax.random.normal(k_feats, (B, IN_DIM), dtype=jnp.float32)

    # weights_init_kaiming on BN -> gamma=1, beta=0 (beta is frozen)
    bn_gamma = jnp.ones((IN_DIM,), dtype=jnp.float32)
    bn_beta = jnp.zeros((IN_DIM,), dtype=jnp.float32)
    # weights_init_classifier -> normal(std=0.001), bias-free linear classifier
    cls_weight = 0.001 * jax.random.normal(k_w, (CLASS_NUM, IN_DIM), dtype=jnp.float32)

    out = bnhead_forward(feats, bn_gamma, bn_beta, cls_weight)
    jax.block_until_ready(out)

    ref_bn, ref_logits = _reference_forward(feats, bn_gamma, bn_beta, cls_weight)
    assert jnp.allclose(out["bn_feats"], ref_bn, atol=1e-4, rtol=1e-4)
    assert jnp.allclose(out["logits"], ref_logits, atol=1e-5, rtol=1e-4)
    assert jnp.allclose(out["logits_distill"], ref_logits, atol=1e-5, rtol=1e-4)

    # bf16-weight path (halves HBM/VMEM traffic of the dominant weight stream).
    out_bf16 = bnhead_forward(feats, bn_gamma, bn_beta,
                              cls_weight.astype(jnp.bfloat16))
    jax.block_until_ready(out_bf16)
    assert jnp.allclose(out_bf16["logits"], ref_logits, atol=1e-3, rtol=1e-2)

    print("KERNEL_OK")
</pallas_src>

<mosaic_0001>
module attributes {stable_mosaic.version = 11 : i64} {
  func.func @_bn_kernel(%arg0: i32, %arg1: memref<8x32xf32, #tpu.memory_space<vmem>>, %arg2: memref<1x32xf32, #tpu.memory_space<vmem>>, %arg3: memref<1x32xf32, #tpu.memory_space<vmem>>, %arg4: memref<8x32xf32, #tpu.memory_space<vmem>>) attributes {dimension_semantics = [#tpu.dimension_semantics<arbitrary>], iteration_bounds = array<i64: 1>, scalar_prefetch = 0 : i64, scratch_operands = 0 : i64, tpu.core_type = #tpu.core_type<tc>, window_params = [{pipeline_mode = #tpu.pipeline_mode<synchronous>, transform_indices = @transform_0, window_bounds = array<i64: 8, 32>}, {pipeline_mode = #tpu.pipeline_mode<synchronous>, transform_indices = @transform_1, window_bounds = array<i64: 1, 32>}, {pipeline_mode = #tpu.pipeline_mode<synchronous>, transform_indices = @transform_2, window_bounds = array<i64: 1, 32>}, {pipeline_mode = #tpu.pipeline_mode<synchronous>, transform_indices = @transform_3, window_bounds = array<i64: 8, 32>}]} {
    %c0 = arith.constant 0 : index
    %c0_0 = arith.constant 0 : index
    %0 = vector.load %arg1[%c0, %c0_0] : memref<8x32xf32, #tpu.memory_space<vmem>>, vector<8x32xf32>
    %cst = arith.constant dense<0.000000e+00> : vector<32xf32>
    %1 = vector.multi_reduction <add>, %0, %cst [0] : vector<8x32xf32> to vector<32xf32>
    %2 = vector.shape_cast %1 : vector<32xf32> to vector<1x32xf32>
    %cst_1 = arith.constant 8.000000e+00 : f32
    %3 = vector.broadcast %cst_1 : f32 to vector<1x32xf32>
    %4 = arith.divf %2, %3 : vector<1x32xf32>
    %5 = vector.broadcast %4 : vector<1x32xf32> to vector<8x32xf32>
    %6 = arith.subf %0, %5 : vector<8x32xf32>
    %7 = arith.mulf %6, %6 : vector<8x32xf32>
    %cst_2 = arith.constant dense<0.000000e+00> : vector<32xf32>
    %8 = vector.multi_reduction <add>, %7, %cst_2 [0] : vector<8x32xf32> to vector<32xf32>
    %9 = vector.shape_cast %8 : vector<32xf32> to vector<1x32xf32>
    %cst_3 = arith.constant 8.000000e+00 : f32
    %10 = vector.broadcast %cst_3 : f32 to vector<1x32xf32>
    %11 = arith.divf %9, %10 : vector<1x32xf32>
    %cst_4 = arith.constant 9.99999974E-6 : f32
    %12 = vector.broadcast %cst_4 : f32 to vector<1x32xf32>
    %13 = arith.addf %11, %12 : vector<1x32xf32>
    %14 = math.rsqrt %13 : vector<1x32xf32>
    %15 = vector.broadcast %14 : vector<1x32xf32> to vector<8x32xf32>
    %16 = arith.mulf %6, %15 : vector<8x32xf32>
    %c0_5 = arith.constant 0 : index
    %c0_6 = arith.constant 0 : index
    %17 = vector.load %arg2[%c0_5, %c0_6] : memref<1x32xf32, #tpu.memory_space<vmem>>, vector<1x32xf32>
    %18 = vector.broadcast %17 : vector<1x32xf32> to vector<8x32xf32>
    %19 = arith.mulf %16, %18 : vector<8x32xf32>
    %c0_7 = arith.constant 0 : index
    %c0_8 = arith.constant 0 : index
    %20 = vector.load %arg3[%c0_7, %c0_8] : memref<1x32xf32, #tpu.memory_space<vmem>>, vector<1x32xf32>
    %21 = vector.broadcast %20 : vector<1x32xf32> to vector<8x32xf32>
    %22 = arith.addf %19, %21 : vector<8x32xf32>
    %c0_9 = arith.constant 0 : index
    %c0_10 = arith.constant 0 : index
    %23 = vector.load %arg4[%c0_9, %c0_10] : memref<8x32xf32, #tpu.memory_space<vmem>>, vector<8x32xf32>
    tpu.vector_store %arg4[%c0_9, %c0_10], %22 {strides = array<i32>} : memref<8x32xf32, #tpu.memory_space<vmem>>, vector<8x32xf32>,
    return
  }
  func.func @transform_0(%arg0: i32) -> (i32, i32) {
    %c0_i32 = arith.constant 0 : i32
    %c0_i32_0 = arith.constant 0 : i32
    %c0_i32_1 = arith.constant 0 : i32
    return %c0_i32, %c0_i32_0 : i32, i32
  }
  func.func @transform_1(%arg0: i32) -> (i32, i32) {
    %c0_i32 = arith.constant 0 : i32
    %c0_i32_0 = arith.constant 0 : i32
    %c0_i32_1 = arith.constant 0 : i32
    return %c0_i32, %c0_i32_0 : i32, i32
  }
  func.func @transform_2(%arg0: i32) -> (i32, i32) {
    %c0_i32 = arith.constant 0 : i32
    %c0_i32_0 = arith.constant 0 : i32
    %c0_i32_1 = arith.constant 0 : i32
    return %c0_i32, %c0_i32_0 : i32, i32
  }
  func.func @transform_3(%arg0: i32) -> (i32, i32) {
    %c0_i32 = arith.constant 0 : i32
    %c0_i32_0 = arith.constant 0 : i32
    %c0_i32_1 = arith.constant 0 : i32
    return %c0_i32, %c0_i32_0 : i32, i32
  }
}

</mosaic_0001>

<bundles_post_ra>
// kernel: tpu_custom_call.1
= control target key start
LH: loop header
LB: loop body
LE: loop exit
PB: predicated region body
PF: predicated region fallthrough
CT: control target
= control target key end

     0   :  { %8 = vsyncpa [#allocation3], 0  ;;  %s238_s0 = inlined_call_operand.hbm [shape: f32[8,32], index: 0, kind: input, shape index: {}]   ;;  %s239_s1 = inlined_call_operand.hbm [shape: f32[1,32], index: 1, kind: input, shape index: {}]   ;;  %s240_s2 = inlined_call_operand.vmem [shape: f32[1,32], index: 2, kind: input, shape index: {}]   ;;  %s241_s3 = inlined_call_operand.hbm [shape: f32[8,32], index: 3, kind: output, shape index: {}]  }
   0x1   :  { %9 = vsyncpa [#allocation6], 0 }
   0x2   :  { %10 = vsyncpa [#allocation4], 0  ;;  %s16_s14 = sshll.u32 %s238_s0, 4  ;;  %s199_s15 = smov [#allocation2]   ;;  %s17_s14 = int_to_ptr.hbm [resolvable:$true] %s16_s14 }
   0x3   :  { %s18_s16 = sshll.u32 %s199_s15, 4  ;;  %s27_s19 = sshll.u32 %s239_s1, 4  ;;  %s19_s16 = int_to_ptr.vmem [resolvable:$true] %s18_s16  ;;  %s28_s19 = int_to_ptr.hbm [resolvable:$true] %s27_s19 }
   0x4   :  { %21 = dma.hbm_to_vmem [thread:$0]  %s17_s14, 128, %s19_s16, [#allocation3]  }
   0x5   :  { %s200_s20 = smov [#allocation5]  }
   0x6   :  { %s29_s21 = sshll.u32 %s200_s20, 4  ;;  %s30_s21 = int_to_ptr.vmem [resolvable:$true] %s29_s21 }
   0x7   :  { %32 = dma.hbm_to_vmem [thread:$0]  %s28_s19, 16, %s30_s21, [#allocation6]  }
   0x8   :  { %193 = dma.done.wait [#allocation3], 128  }
   0x9   :  { %194 = vsyncadd [#allocation3], 4294967168 }
   0xa   :  { %195 = dma.done.wait [#allocation6], 16  }
   0xb   :  { %196 = vsyncadd [#allocation6], 4294967280  ;;  %v201_v0 = vmov 8.0   ;;  %vm44_vm0 = vcmask 261120   ;;  %v43_v2 = vld [vmem:[#allocation2] sm:$0xff]  ;;  %s202_s22 = smov [#allocation7]  }
   0xc   :  { %117 = vrcp.f32 %v201_v0  ;;  %v45_v3 = vsel %vm44_vm0, %v43_v2, 0.0  ;;  %v115_v33 = vld [vmem:[#allocation5] ss:$0 sm:$0xff]  ;;  %v116_v36 = vld [vmem:[%s240_s2] ss:$0 sm:$0xff]  ;;  %s98_s23 = sshll.u32 %s202_s22, 4  ;;  %s99_s23 = int_to_ptr.vmem [resolvable:$true] %s98_s23 }
   0xd   :  { %v46_v5 = vrot.slane %v45_v3, 4  ;;  %s100_s26 = sshll.u32 %s241_s3, 4  ;;  %s101_s26 = int_to_ptr.hbm [resolvable:$true] %s100_s26 }
   0xf   :  { %v47_v7 = vadd.f32 %v46_v5, %v45_v3 }
  0x11   :  { %v48_v9 = vrot.slane %v47_v7, 2 }
  0x12   :  { %v118_v1 = vpop.eup %117 }
  0x13   :  { %v53_v4 = vmul.f32 8.0, %v118_v1  ;;  %v49_v11 = vadd.f32 %v48_v9, %v47_v7  ;;  %vm57_vm1 = vweird.f32 %v118_v1 }
  0x15   :  { %v54_v6 = vsub.f32 1.0, %v53_v4  ;;  %v50_v12 = vrot.slane %v49_v11, 1 }
  0x17   :  { %v55_v8 = vmul.f32 %v118_v1, %v54_v6  ;;  %v51_v14 = vadd.f32 %v50_v12, %v49_v11 }
  0x19   :  { %v56_v10 = vadd.f32 %v118_v1, %v55_v8 }
  0x1b   :  { %v58_v13 = vsel %vm57_vm1, %v118_v1, %v56_v10 }
  0x1c   :  { %v59_v15 = vmul.f32 %v58_v13, %v51_v14 }
  0x1e   :  { %v60_v16 = vsub.f32 %v43_v2, %v59_v15 }
  0x20   :  { %v61_v17 = vmul.f32 %v60_v16, %v60_v16 }
  0x22   :  { %v62_v18 = vsel %vm44_vm0, %v61_v17, 0.0 }
  0x23   :  { %v63_v19 = vrot.slane %v62_v18, 4 }
  0x25   :  { %v64_v20 = vadd.f32 %v63_v19, %v62_v18 }
  0x27   :  { %v65_v21 = vrot.slane %v64_v20, 2 }
  0x29   :  { %v66_v22 = vadd.f32 %v65_v21, %v64_v20 }
  0x2b   :  { %v67_v23 = vrot.slane %v66_v22, 1 }
  0x2d   :  { %v68_v24 = vadd.f32 %v67_v23, %v66_v22 }
  0x2f   :  { %v69_v25 = vmul.f32 %v68_v24, %v58_v13 }
  0x31   :  { %v70_v26 = vadd.f32 1e-05, %v69_v25 }
  0x33   :  { %119 = vrsqrt.f32 %v70_v26  ;;  %vm77_vm2 = vweird.f32 %v70_v26 }
  0x39   :  { %v120_v27 = vpop.eup %119 }
  0x3a   :  { %v72_v28 = vmul.f32 %v120_v27, %v70_v26  ;;  %vm78_vm3 = vweird.f32 %v120_v27 }
  0x3b   :  { %vm79_vm4 = vmor %vm77_vm2, %vm78_vm3 }
  0x3c   :  { %v73_v29 = vmul.f32 %v120_v27, %v72_v28 }
  0x3e   :  { %v74_v30 = vmul.f32 0.5, %v73_v29 }
  0x40   :  { %v75_v31 = vsub.f32 1.5, %v74_v30 }
  0x42   :  { %v76_v32 = vmul.f32 %v120_v27, %v75_v31 }
  0x44   :  { %v80_v34 = vsel %vm79_vm4, %v120_v27, %v76_v32 }
  0x45   :  { %v81_v35 = vmul.f32 %v80_v34, %v60_v16 }
  0x47   :  { %v86_v37 = vmul.f32 %v115_v33, %v81_v35 }
  0x49   :  { %v91_v38 = vadd.f32 %v116_v36, %v86_v37 }
  0x4b   :  { %92 = vst.msk [vmem:[#allocation7] sm:$0xff] %vm44_vm0, %v91_v38 }
  0x4c   :  { %103 = dma.vmem_to_hbm [thread:$0]  %s99_s23, 128, %s101_s26, [#allocation4]  }
  0x4d   :  { %197 = dma.done.wait [#allocation4], 128  }
  0x4e   :  { %198 = vsyncadd [#allocation4], 4294967168 }
  0x4f   :  { %108 = vsyncpa [#allocation3], 1 }
  0x50   :  { %109 = vsyncpa [#allocation6], 1 }
  0x51   :  { %110 = vsyncpa [#allocation4], 1 }

</bundles_post_ra>
